<compile_context>
chip_gen: v5e
topology: v5e:2x2
jax: 0.10.0
libtpu: 0.0.40
codegen_flags: <defaults>
</compile_context>

<pallas_src>
import jax
import jax.numpy as jnp
from jax.experimental import pallas as pl
from jax.experimental.pallas import tpu as pltpu


# ---------------------------------------------------------------------------
# Generation-aware VMEM / tile sizing.
# ---------------------------------------------------------------------------
_VMEM_LIMIT_CACHE = None


def _vmem_limit_bytes():
    """~48 MiB on 64-MiB parts (v7x), 64 MiB on 128-MiB parts (v5e/v6e)."""
    global _VMEM_LIMIT_CACHE
    if _VMEM_LIMIT_CACHE is None:
        try:
            cap = int(pltpu.get_tpu_info().vmem_capacity_bytes)
        except Exception:
            cap = 64 << 20
        _VMEM_LIMIT_CACHE = max(32 << 20, min(64 << 20, (cap * 3) // 4))
    return _VMEM_LIMIT_CACHE


def _choose_tiles(B, C, L, l_tile, b_block, vmem_limit):
    """Pick (batch rows per block, L tile) targeting a few MiB per x block."""
    target = max(2 << 20, min(8 << 20, vmem_limit // 12))
    # L tile: lane-dense multiple of 128, or the full L when it fits.
    if l_tile is None:
        if 4 * C * L <= target:
            l_tile = L
        else:
            l_tile = max(128, ((target // (4 * C)) // 128) * 128)
            l_tile = min(l_tile, L)
    else:
        l_tile = min(int(l_tile), L)
        if l_tile < L:
            l_tile = max(128, (l_tile // 128) * 128)
    # Fold batch rows into the block when a full (C, L) row is small.
    if b_block is None:
        if l_tile == L:
            bb = max(1, min(B, target // max(4 * C * L, 1)))
        else:
            bb = 1
    else:
        bb = max(1, min(int(b_block), B))
    while B % bb:          # bb must divide B exactly (no ragged batch blocks)
        bb -= 1
    return bb, l_tile
    # TODO(synk): add a C grid axis (C-tiling) for very large channel counts
    # so the per-step footprint stays bounded on v7x's 64 MiB VMEM.


# ---------------------------------------------------------------------------
# Pass 1: masked per-channel sum / sum-of-squares (MXU-assisted L reduction).
# ---------------------------------------------------------------------------
def _make_stats_kernel(L, nli):
    def kernel(x_ref, m_ref, sum_ref, sq_ref, sum_acc, sq_acc):
        """x_ref: (Bb, C, Lt); m_ref: (Bb, 1, Lt); outputs (C, 1) partials.

        sum_acc / sq_acc: (C, 128) f32 VMEM accumulators (all 128 lanes hold
        the same value; lane 0 is emitted at the last L step of the group).
        """
        ll = pl.program_id(2)

        @pl.when(ll == 0)
        def _init():
            sum_acc[...] = jnp.zeros_like(sum_acc)
            sq_acc[...] = jnp.zeros_like(sq_acc)

        lt = x_ref.shape[-1]
        # In-bounds lane mask for the (possibly ragged) last L tile.
        lblk = pl.program_id(1) * nli + ll
        lane = jax.lax.broadcasted_iota(jnp.int32, (1, 1, lt), 2)
        in_bounds = (lblk * lt + lane) < L                       # (1,1,Lt)
        valid = jnp.logical_and(m_ref[...] != 0, in_bounds)      # (Bb,1,Lt)

        x = x_ref[...].astype(jnp.float32)                       # (Bb,C,Lt)
        masked = jnp.where(valid, x, 0.0)                        # no NaN leak
        msum = jnp.sum(masked, axis=0)                           # (C,Lt)
        msq = jnp.sum(masked * masked, axis=0)                   # (C,Lt)

        # L-reduction on the MXU (idle otherwise); bf16 operands keep the
        # pass HBM-bound on v5e/v7x, accumulation stays f32.
        ones_rhs = jnp.ones((lt, 128), jnp.bfloat16)
        sum_acc[...] += jnp.dot(msum.astype(jnp.bfloat16), ones_rhs,
                                preferred_element_type=jnp.float32)
        sq_acc[...] += jnp.dot(msq.astype(jnp.bfloat16), ones_rhs,
                               preferred_element_type=jnp.float32)

        @pl.when(ll == pl.num_programs(2) - 1)
        def _finalize():
            sum_ref[...] = sum_acc[...][:, 0:1]
            sq_ref[...] = sq_acc[...][:, 0:1]

    return kernel


def _compute_stats(x, m, bb, l_tile, vmem_limit):
    B, C, L = x.shape
    Bg = B // bb
    n_l = pl.cdiv(L, l_tile)
    # 2-way L-group split keeps both v7x cores busy when Bg is odd (e.g. 1).
    G = 2 if (Bg % 2 == 1 and n_l % 2 == 0 and n_l >= 2) else 1
    nli = n_l // G

    kernel = _make_stats_kernel(L, nli)
    cost = pl.CostEstimate(
        flops=int(6 * x.size), transcendentals=0,
        bytes_accessed=int(x.size * x.dtype.itemsize
                           + m.size * m.dtype.itemsize + 2 * Bg * G * C * 4))
    psum, psq = pl.pallas_call(
        kernel,
        grid=(Bg, G, nli),
        in_specs=[
            pl.BlockSpec((bb, C, l_tile), lambda b, g, l: (b, 0, g * nli + l)),
            pl.BlockSpec((bb, 1, l_tile), lambda b, g, l: (b, 0, g * nli + l)),
        ],
        out_specs=(
            pl.BlockSpec((None, None, C, 1), lambda b, g, l: (b, g, 0, 0)),
            pl.BlockSpec((None, None, C, 1), lambda b, g, l: (b, g, 0, 0)),
        ),
        out_shape=(
            jax.ShapeDtypeStruct((Bg, G, C, 1), jnp.float32),
            jax.ShapeDtypeStruct((Bg, G, C, 1), jnp.float32),
        ),
        scratch_shapes=[
            pltpu.VMEM((C, 128), jnp.float32),
            pltpu.VMEM((C, 128), jnp.float32),
        ],
        compiler_params=pltpu.CompilerParams(
            dimension_semantics=("parallel", "parallel", "arbitrary"),
            vmem_limit_bytes=vmem_limit),
        cost_estimate=cost,
    )(x, m)
    return psum, psq


# ---------------------------------------------------------------------------
# Pass 2: streaming normalization folded to one per-channel FMA.
# ---------------------------------------------------------------------------
def _norm_kernel(x_ref, m_ref, ss_ref, o_ref):
    """out = where(valid, x, 0) * scale + shift; ss_ref packs (scale, shift)."""
    x = x_ref[...].astype(jnp.float32)              # (Bb, C, Lt)
    valid = m_ref[...] != 0                         # (Bb, 1, Lt)
    ss = ss_ref[...]                                # (C, 2) f32
    scale = ss[:, 0:1]                              # (C, 1)
    shift = ss[:, 1:2]                              # (C, 1)
    o_ref[...] = (jnp.where(valid, x, 0.0) * scale + shift).astype(o_ref.dtype)


def _apply_norm(x, m, ss, bb, l_tile, vmem_limit):
    B, C, L = x.shape
    Bg = B // bb
    n_l = pl.cdiv(L, l_tile)
    cost = pl.CostEstimate(
        flops=int(3 * x.size), transcendentals=0,
        bytes_accessed=int(2 * x.size * x.dtype.itemsize
                           + m.size * m.dtype.itemsize + ss.size * 4))
    return pl.pallas_call(
        _norm_kernel,
        grid=(Bg, n_l),
        in_specs=[
            pl.BlockSpec((bb, C, l_tile), lambda b, l: (b, 0, l)),
            pl.BlockSpec((bb, 1, l_tile), lambda b, l: (b, 0, l)),
            pl.BlockSpec((C, 2), lambda b, l: (0, 0)),
        ],
        out_specs=pl.BlockSpec((bb, C, l_tile), lambda b, l: (b, 0, l)),
        out_shape=jax.ShapeDtypeStruct((B, C, L), x.dtype),
        compiler_params=pltpu.CompilerParams(
            dimension_semantics=("parallel", "parallel"),
            vmem_limit_bytes=vmem_limit),
        cost_estimate=cost,
    )(x, m, ss)


# ---------------------------------------------------------------------------
# Host-side wrappers.
# ---------------------------------------------------------------------------
def masked_batch_norm_train(x, x_mask, weight, bias, eps, *,
                            l_tile=None, b_block=None):
    """Training-mode forward. Returns (out, batch_mean, batch_var)."""
    B, C, L = x.shape
    valid = jnp.logical_not(x_mask)                         # (B, L), True = use
    # NOTE: no guard for a fully-masked batch (n == 0), matching the reference.
    n = jnp.sum(valid, dtype=jnp.float32)
    m = valid.astype(x.dtype)[:, None, :]                   # (B, 1, L)

    vmem_limit = _vmem_limit_bytes()
    bb, lt = _choose_tiles(B, C, L, l_tile, b_block, vmem_limit)

    psum, psq = _compute_stats(x, m, bb, lt, vmem_limit)
    s = jnp.sum(psum, axis=(0, 1))                          # (C, 1)
    sq = jnp.sum(psq, axis=(0, 1))                          # (C, 1)
    mean = s / n
    # Padded-zeros convention of the reference: sum over ALL B*L positions of
    # (masked - mean)^2, divided by the valid count n.
    var = (sq - 2.0 * mean * s + float(B * L) * mean * mean) / n
    var = jnp.maximum(var, 0.0)                             # cancellation guard
    inv_std = jax.lax.rsqrt(var + eps)
    scale = weight.astype(jnp.float32) * inv_std            # (C, 1)
    shift = bias.astype(jnp.float32) - mean * scale         # (C, 1)
    ss = jnp.concatenate([scale, shift], axis=1)            # (C, 2)

    out = _apply_norm(x, m, ss, bb, lt, vmem_limit)
    return out, mean.reshape(1, C, 1), var.reshape(1, C, 1)


def masked_batch_norm_apply(x, x_mask, scale, shift, *,
                            l_tile=None, b_block=None):
    """Normalize with precomputed per-channel scale/shift (eval mode)."""
    B, C, L = x.shape
    valid = jnp.logical_not(x_mask)
    m = valid.astype(x.dtype)[:, None, :]
    vmem_limit = _vmem_limit_bytes()
    bb, lt = _choose_tiles(B, C, L, l_tile, b_block, vmem_limit)
    ss = jnp.concatenate([scale.astype(jnp.float32),
                          shift.astype(jnp.float32)], axis=1)
    return _apply_norm(x, m, ss, bb, lt, vmem_limit)


class MaskedBatchNorm1dPallas:
    """JAX/Pallas port of MaskedBatchNorm1d (forward pass)."""

    def __init__(self, num_features, eps=1e-5, momentum=0.1,
                 affine=True, track_running_stats=True):
        self.num_features = num_features
        self.eps = eps
        self.momentum = momentum
        self.affine = affine
        self.track_running_stats = track_running_stats
        self.training = True
        if affine:
            self.weight = jnp.ones((num_features, 1), jnp.float32)
            self.bias = jnp.zeros((num_features, 1), jnp.float32)
        else:
            self.weight = None
            self.bias = None
        if track_running_stats:
            self.running_mean = jnp.zeros((1, num_features, 1), jnp.float32)
            self.running_var = jnp.ones((1, num_features, 1), jnp.float32)
            self.num_batches_tracked = 0
        else:
            self.running_mean = None
            self.running_var = None
            self.num_batches_tracked = None

    def train(self):
        self.training = True
        return self

    def eval(self):
        self.training = False
        return self

    def __call__(self, x, x_mask, *, l_tile=None, b_block=None):
        B, C, L = x.shape
        if C != self.num_features:
            raise ValueError('Expected %d channels but input has %d channels'
                             % (self.num_features, C))
        if x_mask.shape != (B, L):
            raise ValueError('Mask should have shape (B, L).')

        w = self.weight if self.affine else jnp.ones((C, 1), jnp.float32)
        b = self.bias if self.affine else jnp.zeros((C, 1), jnp.float32)

        use_batch_stats = self.training or (not self.track_running_stats)
        if use_batch_stats:
            out, cur_mean, cur_var = masked_batch_norm_train(
                x, x_mask, w, b, self.eps, l_tile=l_tile, b_block=b_block)
            if self.track_running_stats and self.training:
                if self.num_batches_tracked == 0:
                    self.running_mean = cur_mean
                    self.running_var = cur_var
                else:
                    mom = self.momentum
                    self.running_mean = ((1 - mom) * self.running_mean
                                         + mom * cur_mean)
                    self.running_var = ((1 - mom) * self.running_var
                                        + mom * cur_var)
                self.num_batches_tracked += 1
            return out

        # eval with running statistics: same folded-FMA normalize kernel.
        mean = self.running_mean.reshape(C, 1)
        var = self.running_var.reshape(C, 1)
        inv_std = jax.lax.rsqrt(var + self.eps)
        scale = w * inv_std
        shift = b - mean * scale
        return masked_batch_norm_apply(x, x_mask, scale, shift,
                                       l_tile=l_tile, b_block=b_block)


# ---------------------------------------------------------------------------
# Pure-JAX reference (mirrors the PyTorch forward in training mode).
# ---------------------------------------------------------------------------
def _reference(x, x_mask, weight, bias, eps):
    valid = jnp.logical_not(x_mask).astype(jnp.float32)[:, None, :]
    masked = x.astype(jnp.float32) * valid
    n = valid.sum()
    mean = masked.sum(axis=(0, 2), keepdims=True) / n
    var = ((masked - mean) ** 2).sum(axis=(0, 2), keepdims=True) / n
    normed = (masked - mean) / jnp.sqrt(var + eps)
    out = normed * weight[None, :, :] + bias[None, :, :]
    return out, mean, var


if __name__ == "__main__":
    base_key = jax.random.PRNGKey(0)

    def run_case(idx, B, C, L, lengths, l_tile=None, b_block=None, tol=3e-3):
        kx = jax.random.fold_in(base_key, idx)
        x = jax.random.normal(kx, (B, C, L), dtype=jnp.float32)
        pos = jnp.arange(L)[None, :]
        x_mask = pos >= jnp.asarray(lengths, dtype=jnp.int32)[:, None]  # True = pad

        bn = MaskedBatchNorm1dPallas(num_features=C)
        out = jax.block_until_ready(bn(x, x_mask, l_tile=l_tile, b_block=b_block))
        ref_out, ref_mean, ref_var = _reference(x, x_mask, bn.weight, bn.bias,
                                                bn.eps)
        assert out.shape == (B, C, L)
        err = float(jnp.max(jnp.abs(out - ref_out)))
        assert jnp.allclose(out, ref_out, atol=tol, rtol=tol), (
            "case %d: train output mismatch (max err %e)" % (idx, err))
        assert jnp.allclose(bn.running_mean, ref_mean, atol=tol, rtol=tol), (
            "case %d: running_mean mismatch" % idx)
        assert jnp.allclose(bn.running_var, ref_var, atol=tol, rtol=tol), (
            "case %d: running_var mismatch" % idx)

        # eval path (running stats were just set to this batch's stats)
        bn.eval()
        out_e = jax.block_until_ready(bn(x, x_mask, l_tile=l_tile,
                                         b_block=b_block))
        err_e = float(jnp.max(jnp.abs(out_e - ref_out)))
        assert jnp.allclose(out_e, ref_out, atol=2 * tol, rtol=2 * tol), (
            "case %d: eval output mismatch (max err %e)" % (idx, err_e))

    # 1) ragged final L tile, one batch row per block (Bg even -> no L split)
    run_case(0, B=2, C=8, L=320, lengths=[300, 170], l_tile=128, b_block=1)
    # 2) odd batch-group count + even tile count -> 2-way L-group split path
    run_case(1, B=3, C=8, L=512, lengths=[500, 512, 200], l_tile=128, b_block=1)
    # 3) default heuristics: whole-L lane-dense tile with batch rows folded
    run_case(2, B=2, C=8, L=320, lengths=[300, 170])

    print("KERNEL_OK")
</pallas_src>

<mosaic_0001>
module attributes {stable_mosaic.version = 11 : i64} {
  func.func @kernel(%arg0: i32, %arg1: i32, %arg2: i32, %arg3: memref<1x8x128xf32, #tpu.memory_space<vmem>>, %arg4: memref<1x1x128xf32, #tpu.memory_space<vmem>>, %arg5: memref<1x1x8x1xf32, #tpu.memory_space<vmem>>, %arg6: memref<1x1x8x1xf32, #tpu.memory_space<vmem>>, %arg7: memref<8x128xf32, #tpu.memory_space<vmem>>, %arg8: memref<8x128xf32, #tpu.memory_space<vmem>>) attributes {dimension_semantics = [#tpu.dimension_semantics<parallel>, #tpu.dimension_semantics<parallel>, #tpu.dimension_semantics<arbitrary>], iteration_bounds = array<i64: 2, 1, 3>, scalar_prefetch = 0 : i64, scratch_operands = 2 : i64, tpu.core_type = #tpu.core_type<tc>, window_params = [{transform_indices = @transform_0, window_bounds = array<i64: 1, 8, 128>}, {transform_indices = @transform_1, window_bounds = array<i64: 1, 1, 128>}, {transform_indices = @transform_2, window_bounds = array<i64: 1, 1, 8, 1>}, {transform_indices = @transform_3, window_bounds = array<i64: 1, 1, 8, 1>}]} {
    %c0_i32 = arith.constant 0 : i32
    %0 = arith.cmpi eq, %arg2, %c0_i32 : i32
    %1 = arith.extui %0 : i1 to i32
    %c0_i32_0 = arith.constant 0 : i32
    %2 = arith.cmpi ne, %1, %c0_i32_0 : i32
    scf.if %2 {
      %cst_21 = arith.constant 0.000000e+00 : f32
      %37 = vector.broadcast %cst_21 : f32 to vector<8x128xf32>
      %c0_22 = arith.constant 0 : index
      %c0_23 = arith.constant 0 : index
      %38 = vector.load %arg7[%c0_22, %c0_23] : memref<8x128xf32, #tpu.memory_space<vmem>>, vector<8x128xf32>
      tpu.vector_store %arg7[%c0_22, %c0_23], %37 {strides = array<i32>} : memref<8x128xf32, #tpu.memory_space<vmem>>, vector<8x128xf32>,
      %cst_24 = arith.constant 0.000000e+00 : f32
      %39 = vector.broadcast %cst_24 : f32 to vector<8x128xf32>
      %c0_25 = arith.constant 0 : index
      %c0_26 = arith.constant 0 : index
      %40 = vector.load %arg8[%c0_25, %c0_26] : memref<8x128xf32, #tpu.memory_space<vmem>>, vector<8x128xf32>
      tpu.vector_store %arg8[%c0_25, %c0_26], %39 {strides = array<i32>} : memref<8x128xf32, #tpu.memory_space<vmem>>, vector<8x128xf32>,
    } else {
    }
    %c3_i32 = arith.constant 3 : i32
    %3 = arith.muli %arg1, %c3_i32 : i32
    %4 = arith.addi %3, %arg2 : i32
    %5 = tpu.iota {dimensions = array<i32: 2>} : vector<1x1x128xi32>
    %c128_i32 = arith.constant 128 : i32
    %6 = arith.muli %4, %c128_i32 : i32
    %7 = vector.broadcast %6 : i32 to vector<1x1x128xi32>
    %8 = arith.addi %7, %5 : vector<1x1x128xi32>
    %c320_i32 = arith.constant 320 : i32
    %9 = vector.broadcast %c320_i32 : i32 to vector<1x1x128xi32>
    %10 = arith.cmpi slt, %8, %9 : vector<1x1x128xi32>
    %c0 = arith.constant 0 : index
    %c0_1 = arith.constant 0 : index
    %c0_2 = arith.constant 0 : index
    %11 = vector.load %arg4[%c0, %c0_1, %c0_2] : memref<1x1x128xf32, #tpu.memory_space<vmem>>, vector<1x1x128xf32>
    %cst = arith.constant 0.000000e+00 : f32
    %12 = vector.broadcast %cst : f32 to vector<1x1x128xf32>
    %13 = arith.cmpf one, %11, %12 : vector<1x1x128xf32>
    %14 = arith.andi %13, %10 : vector<1x1x128xi1>
    %c0_3 = arith.constant 0 : index
    %c0_4 = arith.constant 0 : index
    %c0_5 = arith.constant 0 : index
    %15 = vector.load %arg3[%c0_3, %c0_4, %c0_5] : memref<1x8x128xf32, #tpu.memory_space<vmem>>, vector<1x8x128xf32>
    %cst_6 = arith.constant 0.000000e+00 : f32
    %16 = vector.shape_cast %14 : vector<1x1x128xi1> to vector<1x1x128xi1>
    %17 = vector.broadcast %16 : vector<1x1x128xi1> to vector<1x8x128xi1>
    %18 = vector.broadcast %cst_6 : f32 to vector<1x8x128xf32>
    %19 = arith.select %17, %15, %18 : vector<1x8x128xi1>, vector<1x8x128xf32>
    %cst_7 = arith.constant dense<0.000000e+00> : vector<8x128xf32>
    %20 = vector.multi_reduction <add>, %19, %cst_7 [0] : vector<1x8x128xf32> to vector<8x128xf32>
    %21 = arith.mulf %19, %19 : vector<1x8x128xf32>
    %cst_8 = arith.constant dense<0.000000e+00> : vector<8x128xf32>
    %22 = vector.multi_reduction <add>, %21, %cst_8 [0] : vector<1x8x128xf32> to vector<8x128xf32>
    %cst_9 = arith.constant 1.000000e+00 : bf16
    %23 = vector.broadcast %cst_9 : bf16 to vector<128x128xbf16>
    %c0_10 = arith.constant 0 : index
    %c0_11 = arith.constant 0 : index
    %24 = vector.load %arg7[%c0_10, %c0_11] : memref<8x128xf32, #tpu.memory_space<vmem>>, vector<8x128xf32>
    %25 = arith.truncf %20 : vector<8x128xf32> to vector<8x128xbf16>
    %cst_12 = arith.constant dense<0.000000e+00> : vector<8x128xf32>
    %26 = tpu.matmul %25, %23, %cst_12 {dimension_numbers = #tpu.dot_dimension_numbers<[1], [0], [0], [1], [0, 0, 1, 1], [], []>} : vector<8x128xbf16>, vector<128x128xbf16>, vector<8x128xf32> -> vector<8x128xf32>
    %27 = arith.addf %24, %26 : vector<8x128xf32>
    %c0_13 = arith.constant 0 : index
    %c0_14 = arith.constant 0 : index
    %28 = vector.load %arg7[%c0_13, %c0_14] : memref<8x128xf32, #tpu.memory_space<vmem>>, vector<8x128xf32>
    tpu.vector_store %arg7[%c0_13, %c0_14], %27 {strides = array<i32>} : memref<8x128xf32, #tpu.memory_space<vmem>>, vector<8x128xf32>,
    %c0_15 = arith.constant 0 : index
    %c0_16 = arith.constant 0 : index
    %29 = vector.load %arg8[%c0_15, %c0_16] : memref<8x128xf32, #tpu.memory_space<vmem>>, vector<8x128xf32>
    %30 = arith.truncf %22 : vector<8x128xf32> to vector<8x128xbf16>
    %cst_17 = arith.constant dense<0.000000e+00> : vector<8x128xf32>
    %31 = tpu.matmul %30, %23, %cst_17 {dimension_numbers = #tpu.dot_dimension_numbers<[1], [0], [0], [1], [0, 0, 1, 1], [], []>} : vector<8x128xbf16>, vector<128x128xbf16>, vector<8x128xf32> -> vector<8x128xf32>
    %32 = arith.addf %29, %31 : vector<8x128xf32>
    %c0_18 = arith.constant 0 : index
    %c0_19 = arith.constant 0 : index
    %33 = vector.load %arg8[%c0_18, %c0_19] : memref<8x128xf32, #tpu.memory_space<vmem>>, vector<8x128xf32>
    tpu.vector_store %arg8[%c0_18, %c0_19], %32 {strides = array<i32>} : memref<8x128xf32, #tpu.memory_space<vmem>>, vector<8x128xf32>,
    %c2_i32 = arith.constant 2 : i32
    %34 = arith.cmpi eq, %arg2, %c2_i32 : i32
    %35 = arith.extui %34 : i1 to i32
    %c0_i32_20 = arith.constant 0 : i32
    %36 = arith.cmpi ne, %35, %c0_i32_20 : i32
    scf.if %36 {
      %c0_21 = arith.constant 0 : index
      %c0_22 = arith.constant 0 : index
      %37 = vector.load %arg7[%c0_21, %c0_22] : memref<8x128xf32, #tpu.memory_space<vmem>>, vector<8x128xf32>
      %38 = vector.extract_strided_slice %37 {offsets = [0, 0], sizes = [8, 1], strides = [1, 1]} : vector<8x128xf32> to vector<8x1xf32>
      %c0_23 = arith.constant 0 : index
      %c0_24 = arith.constant 0 : index
      %c0_25 = arith.constant 0 : index
      %c0_26 = arith.constant 0 : index
      %39 = vector.load %arg5[%c0_23, %c0_24, %c0_25, %c0_26] : memref<1x1x8x1xf32, #tpu.memory_space<vmem>>, vector<1x1x8x1xf32>
      %40 = vector.shape_cast %39 : vector<1x1x8x1xf32> to vector<8x1xf32>
      %41 = vector.shape_cast %38 : vector<8x1xf32> to vector<1x1x8x1xf32>
      tpu.vector_store %arg5[%c0_23, %c0_24, %c0_25, %c0_26], %41 {strides = array<i32>} : memref<1x1x8x1xf32, #tpu.memory_space<vmem>>, vector<1x1x8x1xf32>,
      %c0_27 = arith.constant 0 : index
      %c0_28 = arith.constant 0 : index
      %42 = vector.load %arg8[%c0_27, %c0_28] : memref<8x128xf32, #tpu.memory_space<vmem>>, vector<8x128xf32>
      %43 = vector.extract_strided_slice %42 {offsets = [0, 0], sizes = [8, 1], strides = [1, 1]} : vector<8x128xf32> to vector<8x1xf32>
      %c0_29 = arith.constant 0 : index
      %c0_30 = arith.constant 0 : index
      %c0_31 = arith.constant 0 : index
      %c0_32 = arith.constant 0 : index
      %44 = vector.load %arg6[%c0_29, %c0_30, %c0_31, %c0_32] : memref<1x1x8x1xf32, #tpu.memory_space<vmem>>, vector<1x1x8x1xf32>
      %45 = vector.shape_cast %44 : vector<1x1x8x1xf32> to vector<8x1xf32>
      %46 = vector.shape_cast %43 : vector<8x1xf32> to vector<1x1x8x1xf32>
      tpu.vector_store %arg6[%c0_29, %c0_30, %c0_31, %c0_32], %46 {strides = array<i32>} : memref<1x1x8x1xf32, #tpu.memory_space<vmem>>, vector<1x1x8x1xf32>,
    } else {
    }
    return
  }
  func.func @transform_0(%arg0: i32, %arg1: i32, %arg2: i32) -> (i32, i32, i32) {
    %c3_i32 = arith.constant 3 : i32
    %0 = arith.muli %arg1, %c3_i32 : i32
    %1 = arith.addi %0, %arg2 : i32
    %c0_i32 = arith.constant 0 : i32
    %c0_i32_0 = arith.constant 0 : i32
    return %arg0, %c0_i32, %1 : i32, i32, i32
  }
  func.func @transform_1(%arg0: i32, %arg1: i32, %arg2: i32) -> (i32, i32, i32) {
    %c3_i32 = arith.constant 3 : i32
    %0 = arith.muli %arg1, %c3_i32 : i32
    %1 = arith.addi %0, %arg2 : i32
    %c0_i32 = arith.constant 0 : i32
    %c0_i32_0 = arith.constant 0 : i32
    return %arg0, %c0_i32, %1 : i32, i32, i32
  }
  func.func @transform_2(%arg0: i32, %arg1: i32, %arg2: i32) -> (i32, i32, i32, i32) {
    %c0_i32 = arith.constant 0 : i32
    %c0_i32_0 = arith.constant 0 : i32
    %c0_i32_1 = arith.constant 0 : i32
    return %arg0, %arg1, %c0_i32, %c0_i32_0 : i32, i32, i32, i32
  }
  func.func @transform_3(%arg0: i32, %arg1: i32, %arg2: i32) -> (i32, i32, i32, i32) {
    %c0_i32 = arith.constant 0 : i32
    %c0_i32_0 = arith.constant 0 : i32
    %c0_i32_1 = arith.constant 0 : i32
    return %arg0, %arg1, %c0_i32, %c0_i32_0 : i32, i32, i32, i32
  }
}

</mosaic_0001>

<bundles_post_ra>
// kernel: tpu_custom_call.1
= control target key start
LH: loop header
LB: loop body
LE: loop exit
PB: predicated region body
PF: predicated region fallthrough
CT: control target
= control target key end

     0   :  { %9 = vsyncpa [#allocation5], 0  ;;  %s916_s0 = inlined_call_operand.hbm [shape: f32[2,8,320], index: 0, kind: input, shape index: {}]   ;;  %s917_s1 = inlined_call_operand.hbm [shape: f32[2,1,320], index: 1, kind: input, shape index: {}]   ;;  %s918_s2 = inlined_call_operand.vmem [shape: f32[2,1,8,1], index: 2, kind: output, shape index: {0}]   ;;  %s919_s3 = inlined_call_operand.vmem [shape: f32[2,1,8,1], index: 3, kind: output, shape index: {1}]  }
   0x1   :  { %11 = vsyncpa [#allocation5 + $0x1], 0 }
   0x2   :  { %12 = vsyncpa [#allocation7], 0 }
   0x3   :  { %14 = vsyncpa [#allocation7 + $0x1], 0  ;;  %s773_s12 = smov 0   ;;  %s775_s13 = smov 0  }
   0x4   :  { %s777_s14 = smov 0   ;;  %s779_s15 = smov 0  }
   0x5   :  { %s781_s16 = smov 0   ;;  %s783_s17 = smov 0  }
   0x6   :  { %s785_s18 = smov 0   ;;  %s787_s19 = smov 0  }
   0x7 LB: > { %s519_s20 = sadd.s32 4294967295, %s748_s19   ;;  %s32_s21 = sadd.s32 1, %s740_s17  ;;  %s748_s19 = sphi %s787_s19, %s20_s19   ;;  %s744_s18 = sphi %s785_s18, %s929_s18   ;;  %s740_s17 = sphi %s783_s17, %s928_s17   ;;  %s736_s16 = sphi %s781_s16, %s927_s16   ;;  %s732_s15 = sphi %s779_s15, %s926_s15   ;;  %s728_s14 = sphi %s777_s14, %s925_s14   ;;  %s724_s13 = sphi %s775_s13, %s924_s13   ;;  %s720_s12 = sphi %s773_s12, %s923_s12  }
   0x8   : > { %p33_p0 = scmp.ge.s32.totalorder %s32_s21, 3  ;;  %s39_s22 = sadd.s32 1, %s744_s18 }
   0x9   : > { %s52_s23 = sadd.s32 1, %s728_s14  ;;  %p59_p1 = scmp.ne.s32.totalorder %s728_s14, %s724_s13 }
   0xa   : > { %s931_s21 = smov (%p33_p0, %s32_s21), 0  ;;  %s933_s22 = smov (!%p33_p0, %s39_s22), %s744_s18 }
   0xb   : > { %s48_s24 = ssub.s32 %s740_s17, %s931_s21  ;;  %p60_p2 = scmp.eq.s32.totalorder %s748_s19, 0 }
   0xc   : > { %p41_p3 = scmp.ge.s32.totalorder %s933_s22, 2  ;;  %p65_p4 = scmp.ne.s32.totalorder %s724_s13, %s720_s12 }
   0xd   : > { %p824_p5 = por %p60_p2, %p59_p1  ;;  %p66_p6 = scmp.eq.s32.totalorder %s519_s20, 0 }
   0xe   : > { %s935_s22 = smov (%p41_p3, %s933_s22), 0  ;;  %p550_p8 = scmp.lt.s32.totalorder %s748_s19, 6 }
   0xf   : > { %p830_p7 = por %p66_p6, %p65_p4  ;;  %s47_s27 = ssub.s32 %s744_s18, %s935_s22 }
  0x10   : > { %s49_s28 = sor.u32 %s48_s24, %s47_s27  ;;  %s177_s29 = sand.u32 1, %s728_s14  }
  0x11   : > { %p50_p9 = scmp.eq.s32.totalorder %s49_s28, 0  ;;  %s523_s30 = sshll.u32 %s177_s29, 3 }
  0x12   : > { %s537_s4 = smul.u32 3, %s744_s18  ;;  %s181_s8 = scalar_lea.vmem [#allocation4], %s523_s30 }
  0x13   : > { %s840_s5 = scalar_select %p50_p9, %s728_s14, %s52_s23  }
  0x14   : > { %s187_s6 = sadd.s32 %s740_s17, %s537_s4  ;;  %s193_s9 = sshll.u32 %s181_s8, 4  ;;  %s194_s9 = int_to_ptr.vmem [resolvable:$true] %s193_s9 }
  0x15   : > { %s524_s7 = sshll.u32 %s187_s6, 3  ;;  %p850_p10 = pnand %p550_p8, %p824_p5 }
  0x16   : > { %s189_s12 = scalar_lea.hbm %s916_s0, %s524_s7  ;;  %p525_p11 = scmp.ge.s32.totalorder %s748_s19, 1 }
  0x17   : > { %s191_s20 = sshll.u32 %s189_s12, 4  ;;  %p219_p12 = scmp.lt.s32.totalorder %s748_s19, 7  ;;  %s192_s20 = int_to_ptr.hbm [resolvable:$true] %s191_s20 }
  0x18   : > { %s178_s23 = scalar_lea.sflag [#allocation5], %s177_s29  ;;  %s210_s30 = scalar_lea.hbm %s917_s1, %s187_s6 }
  0x19   : > { %546 = dma.hbm_to_vmem [thread:$0]  (!%p850_p10), %s192_s20, 128, %s194_s9, %s178_s23  }
  0x1a   : > { %p220_p13 = pnand %p525_p11, %p219_p12  ;;  %s212_s4 = sshll.u32 %s210_s30, 4  ;;  %s213_s4 = int_to_ptr.hbm [resolvable:$true] %s212_s4 }
  0x1b   : > { %s203_s25 = scalar_lea.vmem [#allocation6], %s177_s29  ;;  %s201_s8 = scalar_lea.sflag [#allocation7], %s177_s29 }
  0x1c   : > { %s214_s7 = sshll.u32 %s203_s25, 4  ;;  %223 = sbr.rel (%p220_p13) target bundleno = 216 (0xd8), region = 28  ;;  %s215_s7 = int_to_ptr.vmem [resolvable:$true] %s214_s7 }
  0x1d   : > { %549 = dma.hbm_to_vmem [thread:$0]  (!%p850_p10), %s213_s4, 16, %s215_s7, %s201_s8  }
  0x1e   : > { %s225_s10 = sand.u32 (!%p220_p13), 1, %s724_s13  }
  0x1f   : > { %s526_s11 = sshll.u32 (!%p220_p13), %s225_s10, 3  ;;  %s226_s12 = scalar_lea.sflag (!%p220_p13), [#allocation5], %s225_s10 }
  0x20   : > { %s864_s9 = scalar_lea.vmem (!%p220_p13), [#allocation4], %s526_s11 }
  0x21   : > { %711 = dma.done.wait (%p830_p7), %s226_s12, 128  }
  0x22   : > { %713 = vsyncadd (%p830_p7), %s226_s12, 4294967168  ;;  %s236_s6 = scalar_lea.sflag [#allocation7], %s225_s10  ;;  %s238_s20 = scalar_lea.vmem [#allocation6], %s225_s10 }
  0x23   : > { %715 = dma.done.wait (%p830_p7), %s236_s6, 16  }
  0x24   : > { %717 = vsyncadd (%p830_p7), %s236_s6, 4294967280  ;;  %p279_p0 = scmp.lt.s32.totalorder %s736_s16, 1  ;;  %p529_p1 = scmp.ne.s32.totalorder %s732_s15, 0 }
  0x26   : > { %s937_s16 = smov (!%p279_p0, %s736_s16), 1  ;;  %297 = sbr.rel (%p529_p1) target bundleno = 46 (0x2e), region = 40 }
  0x27   : > { %s527_s29 = sshll.u32 %s937_s16, 3 }
  0x28   : > { %s879_s27 = scalar_lea.vmem %s918_s2, %s527_s29  ;;  %s884_s4 = scalar_lea.vmem %s919_s3, %s527_s29 }
  0x2b   : > { %v750_v0 = vmov 0.0  }
  0x2c   : > { %298 = vst [vmem:[#allocation2] sm:$0xff] %v750_v0 }
  0x2d   : > { %299 = vst [vmem:[#allocation3] sm:$0xff] %v750_v0 }
  0x2e PF: > { %v302_v1 = vlaneseq  ;;  %s530_s16 = sshll.u32 %s732_s15, 7  ;;  %v751_v2 = vmov 1065369472   ;;  %v308_v5 = vld [vmem:[%s238_s20] sm:$0x1]  ;;  %v752_v7 = vmov 0  }
  0x2f   : > { %321 = vmatpush.bf16.msra.mxu0 %v751_v2  ;;  %338 = vmatpush.bf16.msra.mxu1 %v751_v2  ;;  %v305_v3 = vstv %s530_s16  ;;  %vm309_vm0 = vcmp.ne.f32.partialorder %v308_v5, 0.0  ;;  %v311_v10 = vld [vmem:[%s864_s9] sm:$0xff]  ;;  %p534_p2 = scmp.ne.s32.totalorder %s732_s15, 2 }
  0x30   : > { %v303_v4 = vand.u32 127, %v302_v1  ;;  %v532_v13 = vpack.c.bf16 %v311_v10, %v311_v10 }
  0x32   : > { %v306_v6 = vadd.s32 %v305_v3, %v303_v4 }
  0x33   : > { %322 = vmatpush.bf16.msra.mxu0 %v751_v2  ;;  %339 = vmatpush.bf16.msra.mxu1 %v751_v2  ;;  %v319_v15 = vld [vmem:[#allocation2] sm:$0xff] }
  0x34   : > { %vm307_vm1 = vcmp.lt.s32.totalorder %v306_v6, 320  ;;  %v336_v16 = vld [vmem:[#allocation3] sm:$0xff] }
  0x35   : > { %vm310_vm2 = vmand %vm309_vm0, %vm307_vm1 }
  0x36   : > { %v312_v8 = vsel %vm310_vm2, 1, %v752_v7 }
  0x37   : > { %323 = vmatpush.bf16.msra.mxu0 %v751_v2  ;;  %340 = vmatpush.bf16.msra.mxu1 %v751_v2  ;;  %v313_v9 = vperm.slane %v312_v8, 0 }
  0x39   : > { %vm314_vm3 = vcmp.eq.s32.totalorder %v313_v9, 1 }
  0x3a   : > { %v315_v11 = vsel %vm314_vm3, %v311_v10, 0.0  ;;  %vm531_vm4 = vmpackc.low %vm314_vm3, %vm314_vm3 }
  0x3b   : > { %324 = vmatpush.bf16.msra.mxu0 %v751_v2  ;;  %341 = vmatpush.bf16.msra.mxu1 %v751_v2  ;;  %v317_v12 = vmul.f32 %v315_v11, %v315_v11 }
  0x3d   : > { %v337_v14 = vpack.c.bf16 %v317_v12, %v317_v12 }
  0x3f   : > { %325 = vmatpush.bf16.msra.mxu0 %v751_v2  ;;  %342 = vmatpush.bf16.msra.mxu1 %v751_v2 }
  0x43   : > { %326 = vmatpush.bf16.msra.mxu0 %v751_v2  ;;  %343 = vmatpush.bf16.msra.mxu1 %v751_v2 }
  0x47   : > { %327 = vmatpush.bf16.msra.mxu0 %v751_v2  ;;  %344 = vmatpush.bf16.msra.mxu1 %v751_v2 }
  0x4b   : > { %328 = vmatpush.bf16.msra.mxu0 %v751_v2  ;;  %345 = vmatpush.bf16.msra.mxu1 %v751_v2 }
  0x4e   : > { %533 = vmatmul.msk.bf16.vlgmr.msra.gmra.mxu0 %vm531_vm4, %v532_v13  ;;  %346 = vmatmul.bf16.vlgmr.msra.gmra.mxu1 %v337_v14 }
  0xcb   : > { %v330_v17 = vpop.f32.mrf.mxu0  ;;  %v347_v18 = vpop.f32.mrf.mxu1 }
  0xcc   : > { %v334_v19 = vadd.f32 %v330_v17, %v319_v15  ;;  %v351_v20 = vadd.f32 %v347_v18, %v336_v16 }
  0xce   : > { %335 = vst [vmem:[#allocation2] sm:$0xff] %v334_v19 }
  0xcf   : > { %352 = vst [vmem:[#allocation3] sm:$0xff] %v351_v20  ;;  %356 = sbr.rel (%p534_p2) target bundleno = 216 (0xd8), region = 44 }
  0xd3   : > { %v332_v21 = vpop.f32.mrf.mxu0  ;;  %v349_v22 = vpop.f32.mrf.mxu1 }
  0xd4   : > { %vm358_vm5 = vcmask 7168  }
  0xd5   : > { %v357_v23 = vld [vmem:[#allocation2] sm:$0xff] }
  0xd6   : > { %v360_v24 = vld [vmem:[#allocation3] sm:$0xff]  ;;  %359 = vst.msk [vmem:[%s879_s27] sm:$0xff] %vm358_vm5, %v357_v23 }
  0xd7   : > { %361 = vst.msk [vmem:[%s884_s4] sm:$0xff] %vm358_vm5, %v360_v24 }
  0xd8 PF: > { %s20_s19 = sadd.s32 1, %s748_s19   ;;  %s923_s12 = smov %s724_s13 }
  0xd9   : > { %p17_p3 = scmp.ge.s32.totalorder %s20_s19, 8   ;;  %s924_s13 = smov %s728_s14 }
  0xda   : > { %s925_s14 = smov %s840_s5  ;;  %s926_s15 = smov %s740_s17 }
  0xdb   : > { %s927_s16 = smov %s744_s18  ;;  %s928_s17 = smov %s931_s21 }
  0xdc   : > { %s929_s18 = smov %s935_s22  ;;  %19 = sbr.rel (!%p17_p3) target bundleno = 7 (0x7), region = 101 }
  0xe1   :  { %407 = vsyncpa [#allocation5], 1 }
  0xe2   :  { %409 = vsyncpa [#allocation5 + $0x1], 1 }
  0xe3   :  { %410 = vsyncpa [#allocation7], 1 }
  0xe4   :  { %412 = vsyncpa [#allocation7 + $0x1], 1 }

</bundles_post_ra>
